<compile_context>
chip_gen: v6e
topology: v6e:2x2x1
jax: 0.10.0
libtpu: 0.0.40
codegen_flags: <defaults>
</compile_context>

<pallas_src>
import jax
import jax.numpy as jnp
from jax.experimental import pallas as pl
from jax.experimental.pallas import tpu as pltpu


# ----------------------------------------------------------------------------
# Kernel: one (batch-block, Lx-tile) per grid step.
#   x_ref       : (Bt, Lxt, Dx)   bf16 (or f32)
#   y_ref       : (Bt, Ly,  Dy)   bf16 (or f32)
#   keep_ref    : (Bt, 1, Ly)     f32; 1.0 valid column, 0.0 masked column
#   colbias_ref : (Bt, 1, Ly)     f32; bo where valid, -1e7 where masked
#   w1_ref      : (Dx, M)         linear1.weight^T
#   b1_ref      : (1, M)          linear1.bias
#   w2_ref      : (Dy, M)         linear2.weight^T
#   b2_ref      : (1, M)          linear2.bias
#   wo_ref      : (1, M)          o_liner.weight
#   out_ref     : (Bt, Lxt, Ly)   softmax attention weights (alpha), f32
# ----------------------------------------------------------------------------
def _seq_attn_kernel(x_ref, y_ref, keep_ref, colbias_ref,
                     w1_ref, b1_ref, w2_ref, b2_ref, wo_ref, out_ref):
    bt, lxt, dx = x_ref.shape
    _, ly, dy = y_ref.shape

    # Flatten the batch block into the matmul M-dim: one big MXU matmul each.
    x2 = x_ref[...].reshape(bt * lxt, dx)                       # (Bt*Lxt, Dx)
    y2 = y_ref[...].reshape(bt * ly, dy)                        # (Bt*Ly,  Dy)

    x_proj = jnp.maximum(
        jnp.dot(x2, w1_ref[...], preferred_element_type=jnp.float32)
        + b1_ref[...], 0.0)                                     # (Bt*Lxt, M) f32
    y_proj = jnp.maximum(
        jnp.dot(y2, w2_ref[...], preferred_element_type=jnp.float32)
        + b2_ref[...], 0.0)                                     # (Bt*Ly, M)  f32

    # o_liner decomposition: per-row / per-column scores via VPU mul + lane
    # reduce (avoids two width-1 MXU matmuls).
    wo = wo_ref[...]                                            # (1, M) f32
    sx = jnp.sum(x_proj * wo, axis=-1, keepdims=True)           # (Bt*Lxt, 1)
    sy = jnp.sum(y_proj * wo, axis=-1, keepdims=True)           # (Bt*Ly, 1)
    sx = sx.reshape(bt, lxt, 1)                                 # (Bt, Lxt, 1)
    sy = sy.reshape(bt, 1, ly)                                  # (Bt, 1, Ly)

    # Exact masked_fill_ semantics via per-column keep/colbias:
    #   valid  j: score = sx + sy + bo
    #   masked j: score = 0*sx + (-1e7)  == -1e7 exactly
    keep = keep_ref[...]                                        # (Bt, 1, Ly)
    col = sy * keep + colbias_ref[...]                          # (Bt, 1, Ly)
    scores = sx * keep + col                                    # (Bt, Lxt, Ly)

    # Numerically-stable row softmax over Ly (all on-chip, f32).
    mx = jnp.max(scores, axis=-1, keepdims=True)
    e = jnp.exp(scores - mx)
    denom = jnp.sum(e, axis=-1, keepdims=True)
    out_ref[...] = (e * pl.reciprocal(denom, approx=True)).astype(out_ref.dtype)


# ----------------------------------------------------------------------------
# Heuristic batch-block size: largest divisor of B that fits a modest VMEM
# budget while keeping >= 2 grid steps (so v7x's two TensorCores both work).
# ----------------------------------------------------------------------------
def _pick_bt(B, Lx, Ly, Dx, Dy, M, in_itemsize,
             budget_bytes=8 << 20, max_bt=64):
    per_b = ((Lx * Dx + Ly * Dy) * in_itemsize        # streamed x / y block
             + 3 * Lx * Ly * 4                        # scores / exp / output
             + (Lx + Ly) * M * 4                      # projections
             + 2 * Ly * 4)                            # keep / colbias
    best = 1
    for cand in range(1, min(B, max_bt) + 1):
        if B % cand:
            continue
        if cand * per_b > budget_bytes:
            continue
        if B // cand >= 2 or B < 2:
            best = cand
    return best


# ----------------------------------------------------------------------------
# Wrapper
# ----------------------------------------------------------------------------
def seq_attn_weights_forward(x, y, y_mask, params, *, bt=None, lx_tile=None,
                             compute_dtype=jnp.bfloat16):
    """x: (B, Lx, Dx), y: (B, Ly, Dy), y_mask: (B, Ly) bool (True = padding).
    Returns alpha: (B, Lx, Ly) float32."""
    w1, b1 = params["w1"], params["b1"]
    w2, b2 = params["w2"], params["b2"]
    wo, bo = params["wo"], params["bo"]

    B, Lx, Dx = x.shape
    _, Ly, Dy = y.shape
    M = w1.shape[0]
    in_itemsize = jnp.dtype(compute_dtype).itemsize

    # bf16 operands for the MXU (halves streamed HBM->VMEM bytes); biases and
    # all post-matmul math stay f32.
    xc = jnp.asarray(x, compute_dtype)
    yc = jnp.asarray(y, compute_dtype)
    w1t = jnp.asarray(w1.T, compute_dtype)                # (Dx, M)
    w2t = jnp.asarray(w2.T, compute_dtype)                # (Dy, M)
    b1r = jnp.asarray(b1, jnp.float32).reshape(1, M)
    b2r = jnp.asarray(b2, jnp.float32).reshape(1, M)
    wor = jnp.asarray(wo, jnp.float32).reshape(1, M)
    bo_f = jnp.asarray(bo, jnp.float32).reshape(())

    # Fold mask + o_liner bias into O(Ly) per-column terms (no (Lx,Ly) where
    # in the kernel, no separate bo operand).
    maskf = jnp.asarray(y_mask, jnp.float32).reshape(B, 1, Ly)
    keep = 1.0 - maskf                                   # 1 valid, 0 masked
    colbias = keep * bo_f + maskf * jnp.float32(-1.0e7)  # bo valid, -1e7 masked

    if bt is None:
        bt = _pick_bt(B, Lx, Ly, Dx, Dy, M, in_itemsize)
    assert B % bt == 0, (B, bt)
    if lx_tile is None:
        lx_tile = Lx                                     # fits VMEM at these sizes
    assert Lx % lx_tile == 0 and (lx_tile == Lx or lx_tile % 8 == 0), (Lx, lx_tile)

    # Rough per-step VMEM need (double-buffered blocks + intermediates); only
    # raise the scoped limit when the default (32 MiB) would be exceeded.
    blk_in = bt * ((lx_tile * Dx + Ly * Dy) * in_itemsize + 2 * Ly * 4)
    blk_out = bt * lx_tile * Ly * 4
    blk_w = (Dx + Dy) * M * in_itemsize + 3 * M * 4
    interm = bt * ((lx_tile + Ly) * M * 4 + 3 * lx_tile * Ly * 4)
    vmem_needed = 2 * (blk_in + blk_out + blk_w) + interm
    vmem_limit = None
    if vmem_needed > (32 << 20):
        vmem_limit = min(int(vmem_needed * 1.25), 128 << 20)

    grid = (B // bt, Lx // lx_tile)

    # NOTE: with small Ly (<128) the output store is a masked partial store;
    # for production sizes pad/choose Ly as a multiple of 128 (lane-dense
    # stores are the biggest store-side lever, esp. on v5e).
    return pl.pallas_call(
        _seq_attn_kernel,
        out_shape=jax.ShapeDtypeStruct((B, Lx, Ly), jnp.float32),
        grid=grid,
        in_specs=[
            pl.BlockSpec((bt, lx_tile, Dx), lambda b, i: (b, i, 0)),
            pl.BlockSpec((bt, Ly, Dy), lambda b, i: (b, 0, 0)),
            pl.BlockSpec((bt, 1, Ly), lambda b, i: (b, 0, 0)),   # keep
            pl.BlockSpec((bt, 1, Ly), lambda b, i: (b, 0, 0)),   # colbias
            pl.BlockSpec((Dx, M), lambda b, i: (0, 0)),
            pl.BlockSpec((1, M), lambda b, i: (0, 0)),
            pl.BlockSpec((Dy, M), lambda b, i: (0, 0)),
            pl.BlockSpec((1, M), lambda b, i: (0, 0)),
            pl.BlockSpec((1, M), lambda b, i: (0, 0)),
        ],
        out_specs=pl.BlockSpec((bt, lx_tile, Ly), lambda b, i: (b, i, 0)),
        compiler_params=pltpu.CompilerParams(
            dimension_semantics=("parallel", "parallel"),
            vmem_limit_bytes=vmem_limit),
    )(xc, yc, keep, colbias, w1t, b1r, w2t, b2r, wor)


# ----------------------------------------------------------------------------
# Pure-JAX reference following the literal PyTorch formulation (rank-4 expand).
# compute_dtype lets us mirror the kernel's bf16 matmul operands for a tight
# apples-to-apples comparison.
# ----------------------------------------------------------------------------
def seq_attn_weights_ref(x, y, y_mask, params, compute_dtype=jnp.float32):
    w1, b1 = params["w1"], params["b1"]
    w2, b2 = params["w2"], params["b2"]
    wo, bo = params["wo"], params["bo"]
    xc, yc = x.astype(compute_dtype), y.astype(compute_dtype)
    w1c, w2c = w1.astype(compute_dtype), w2.astype(compute_dtype)
    x_proj = jax.nn.relu(
        jnp.einsum("bld,md->blm", xc, w1c, preferred_element_type=jnp.float32) + b1)
    y_proj = jax.nn.relu(
        jnp.einsum("bld,md->blm", yc, w2c, preferred_element_type=jnp.float32) + b2)
    s = x_proj[:, :, None, :] + y_proj[:, None, :, :]            # (B,Lx,Ly,M)
    raw = jnp.einsum("bxym,m->bxy", s, wo[0]) + bo[0]            # (B,Lx,Ly)
    raw = jnp.where(y_mask[:, None, :], -1.0e7, raw)
    return jax.nn.softmax(raw, axis=-1)


# ----------------------------------------------------------------------------
# Deterministic parameter init (torch nn.Linear default: U(-1/sqrt(fan_in),..))
# ----------------------------------------------------------------------------
def init_params(key, x_input_size, y_input_size, mapped_dim):
    ks = jax.random.split(key, 6)

    def u(k, shape, fan_in):
        bound = 1.0 / (fan_in ** 0.5)
        return jax.random.uniform(k, shape, jnp.float32, -bound, bound)

    return {
        "w1": u(ks[0], (mapped_dim, x_input_size), x_input_size),
        "b1": u(ks[1], (mapped_dim,), x_input_size),
        "w2": u(ks[2], (mapped_dim, y_input_size), y_input_size),
        "b2": u(ks[3], (mapped_dim,), y_input_size),
        "wo": u(ks[4], (1, mapped_dim), mapped_dim),
        "bo": u(ks[5], (1,), mapped_dim),
    }


if __name__ == "__main__":
    B, LX, LY, DX, DY, M = 8, 8, 16, 16, 16, 32

    root = jax.random.PRNGKey(0)
    kx, ky, kp = jax.random.split(root, 3)
    x = jax.random.normal(kx, (B, LX, DX), jnp.float32)
    y = jax.random.normal(ky, (B, LY, DY), jnp.float32)
    lengths = jnp.array([16, 13, 9, 5, 2, 11, 16, 7], jnp.int32)
    y_mask = jnp.arange(LY)[None, :] >= lengths[:, None]        # True = padding
    params = init_params(kp, DX, DY, M)

    out = jax.block_until_ready(seq_attn_weights_forward(x, y, y_mask, params))
    assert out.shape == (B, LX, LY), out.shape

    # Tight check vs. a reference that uses the same bf16 matmul operands.
    ref_bf16 = seq_attn_weights_ref(x, y, y_mask, params, compute_dtype=jnp.bfloat16)
    err_tight = float(jnp.max(jnp.abs(out - ref_bf16)))
    assert err_tight < 2e-3, err_tight

    # Sanity check vs. the full-f32 literal (rank-4) PyTorch formulation.
    ref_f32 = seq_attn_weights_ref(x, y, y_mask, params)
    err_f32 = float(jnp.max(jnp.abs(out - ref_f32)))
    assert err_f32 < 3e-2, err_f32

    assert jnp.allclose(out.sum(-1), 1.0, atol=5e-3)            # rows are softmaxes
    assert float(out[2, :, 9:].max()) < 1e-6                    # masked cols ~ 0

    print("KERNEL_OK")
</pallas_src>

<mosaic_0001>
module attributes {stable_mosaic.version = 11 : i64} {
  func.func @_seq_attn_kernel(%arg0: i32, %arg1: i32, %arg2: memref<4x8x16xbf16, #tpu.memory_space<vmem>>, %arg3: memref<4x16x16xbf16, #tpu.memory_space<vmem>>, %arg4: memref<4x1x16xf32, #tpu.memory_space<vmem>>, %arg5: memref<4x1x16xf32, #tpu.memory_space<vmem>>, %arg6: memref<16x32xbf16, #tpu.memory_space<vmem>>, %arg7: memref<1x32xf32, #tpu.memory_space<vmem>>, %arg8: memref<16x32xbf16, #tpu.memory_space<vmem>>, %arg9: memref<1x32xf32, #tpu.memory_space<vmem>>, %arg10: memref<1x32xf32, #tpu.memory_space<vmem>>, %arg11: memref<4x8x16xf32, #tpu.memory_space<vmem>>) attributes {dimension_semantics = [#tpu.dimension_semantics<parallel>, #tpu.dimension_semantics<parallel>], iteration_bounds = array<i64: 2, 1>, scalar_prefetch = 0 : i64, scratch_operands = 0 : i64, tpu.core_type = #tpu.core_type<tc>, window_params = [{transform_indices = @transform_0, window_bounds = array<i64: 4, 8, 16>}, {transform_indices = @transform_1, window_bounds = array<i64: 4, 16, 16>}, {transform_indices = @transform_2, window_bounds = array<i64: 4, 1, 16>}, {transform_indices = @transform_3, window_bounds = array<i64: 4, 1, 16>}, {pipeline_mode = #tpu.pipeline_mode<synchronous>, transform_indices = @transform_4, window_bounds = array<i64: 16, 32>}, {pipeline_mode = #tpu.pipeline_mode<synchronous>, transform_indices = @transform_5, window_bounds = array<i64: 1, 32>}, {pipeline_mode = #tpu.pipeline_mode<synchronous>, transform_indices = @transform_6, window_bounds = array<i64: 16, 32>}, {pipeline_mode = #tpu.pipeline_mode<synchronous>, transform_indices = @transform_7, window_bounds = array<i64: 1, 32>}, {pipeline_mode = #tpu.pipeline_mode<synchronous>, transform_indices = @transform_8, window_bounds = array<i64: 1, 32>}, {transform_indices = @transform_9, window_bounds = array<i64: 4, 8, 16>}]} {
    %c0 = arith.constant 0 : index
    %c0_0 = arith.constant 0 : index
    %c0_1 = arith.constant 0 : index
    %0 = vector.load %arg2[%c0, %c0_0, %c0_1] : memref<4x8x16xbf16, #tpu.memory_space<vmem>>, vector<4x8x16xbf16>
    %1 = vector.shape_cast %0 : vector<4x8x16xbf16> to vector<32x16xbf16>
    %c0_2 = arith.constant 0 : index
    %c0_3 = arith.constant 0 : index
    %c0_4 = arith.constant 0 : index
    %2 = vector.load %arg3[%c0_2, %c0_3, %c0_4] : memref<4x16x16xbf16, #tpu.memory_space<vmem>>, vector<4x16x16xbf16>
    %3 = vector.shape_cast %2 : vector<4x16x16xbf16> to vector<64x16xbf16>
    %c0_5 = arith.constant 0 : index
    %c0_6 = arith.constant 0 : index
    %4 = vector.load %arg6[%c0_5, %c0_6] : memref<16x32xbf16, #tpu.memory_space<vmem>>, vector<16x32xbf16>
    %cst = arith.constant dense<0.000000e+00> : vector<32x32xf32>
    %5 = tpu.matmul %1, %4, %cst {dimension_numbers = #tpu.dot_dimension_numbers<[1], [0], [0], [1], [0, 0, 1, 1], [], []>} : vector<32x16xbf16>, vector<16x32xbf16>, vector<32x32xf32> -> vector<32x32xf32>
    %c0_7 = arith.constant 0 : index
    %c0_8 = arith.constant 0 : index
    %6 = vector.load %arg7[%c0_7, %c0_8] : memref<1x32xf32, #tpu.memory_space<vmem>>, vector<1x32xf32>
    %7 = vector.broadcast %6 : vector<1x32xf32> to vector<32x32xf32>
    %8 = arith.addf %5, %7 : vector<32x32xf32>
    %cst_9 = arith.constant 0.000000e+00 : f32
    %9 = vector.broadcast %cst_9 : f32 to vector<32x32xf32>
    %10 = arith.maximumf %8, %9 : vector<32x32xf32>
    %c0_10 = arith.constant 0 : index
    %c0_11 = arith.constant 0 : index
    %11 = vector.load %arg8[%c0_10, %c0_11] : memref<16x32xbf16, #tpu.memory_space<vmem>>, vector<16x32xbf16>
    %cst_12 = arith.constant dense<0.000000e+00> : vector<64x32xf32>
    %12 = tpu.matmul %3, %11, %cst_12 {dimension_numbers = #tpu.dot_dimension_numbers<[1], [0], [0], [1], [0, 0, 1, 1], [], []>} : vector<64x16xbf16>, vector<16x32xbf16>, vector<64x32xf32> -> vector<64x32xf32>
    %c0_13 = arith.constant 0 : index
    %c0_14 = arith.constant 0 : index
    %13 = vector.load %arg9[%c0_13, %c0_14] : memref<1x32xf32, #tpu.memory_space<vmem>>, vector<1x32xf32>
    %14 = vector.broadcast %13 : vector<1x32xf32> to vector<64x32xf32>
    %15 = arith.addf %12, %14 : vector<64x32xf32>
    %cst_15 = arith.constant 0.000000e+00 : f32
    %16 = vector.broadcast %cst_15 : f32 to vector<64x32xf32>
    %17 = arith.maximumf %15, %16 : vector<64x32xf32>
    %c0_16 = arith.constant 0 : index
    %c0_17 = arith.constant 0 : index
    %18 = vector.load %arg10[%c0_16, %c0_17] : memref<1x32xf32, #tpu.memory_space<vmem>>, vector<1x32xf32>
    %19 = vector.broadcast %18 : vector<1x32xf32> to vector<32x32xf32>
    %20 = arith.mulf %10, %19 : vector<32x32xf32>
    %cst_18 = arith.constant dense<0.000000e+00> : vector<32xf32>
    %21 = vector.multi_reduction <add>, %20, %cst_18 [1] : vector<32x32xf32> to vector<32xf32>
    %22 = vector.shape_cast %21 : vector<32xf32> to vector<32x1xf32>
    %23 = vector.broadcast %18 : vector<1x32xf32> to vector<64x32xf32>
    %24 = arith.mulf %17, %23 : vector<64x32xf32>
    %cst_19 = arith.constant dense<0.000000e+00> : vector<64xf32>
    %25 = vector.multi_reduction <add>, %24, %cst_19 [1] : vector<64x32xf32> to vector<64xf32>
    %26 = vector.shape_cast %25 : vector<64xf32> to vector<64x1xf32>
    %27 = vector.shape_cast %22 : vector<32x1xf32> to vector<4x8x1xf32>
    %28 = vector.shape_cast %26 : vector<64x1xf32> to vector<4x1x16xf32>
    %c0_20 = arith.constant 0 : index
    %c0_21 = arith.constant 0 : index
    %c0_22 = arith.constant 0 : index
    %29 = vector.load %arg4[%c0_20, %c0_21, %c0_22] : memref<4x1x16xf32, #tpu.memory_space<vmem>>, vector<4x1x16xf32>
    %30 = arith.mulf %28, %29 : vector<4x1x16xf32>
    %c0_23 = arith.constant 0 : index
    %c0_24 = arith.constant 0 : index
    %c0_25 = arith.constant 0 : index
    %31 = vector.load %arg5[%c0_23, %c0_24, %c0_25] : memref<4x1x16xf32, #tpu.memory_space<vmem>>, vector<4x1x16xf32>
    %32 = arith.addf %30, %31 : vector<4x1x16xf32>
    %33 = vector.broadcast %27 : vector<4x8x1xf32> to vector<4x8x16xf32>
    %34 = vector.broadcast %29 : vector<4x1x16xf32> to vector<4x8x16xf32>
    %35 = arith.mulf %33, %34 : vector<4x8x16xf32>
    %36 = vector.broadcast %32 : vector<4x1x16xf32> to vector<4x8x16xf32>
    %37 = arith.addf %35, %36 : vector<4x8x16xf32>
    %cst_26 = arith.constant dense<0xFF800000> : vector<4x8xf32>
    %38 = vector.multi_reduction <maximumf>, %37, %cst_26 [2] : vector<4x8x16xf32> to vector<4x8xf32>
    %39 = vector.shape_cast %38 : vector<4x8xf32> to vector<4x8x1xf32>
    %40 = vector.broadcast %39 : vector<4x8x1xf32> to vector<4x8x16xf32>
    %41 = arith.subf %37, %40 : vector<4x8x16xf32>
    %42 = math.exp %41 : vector<4x8x16xf32>
    %cst_27 = arith.constant dense<0.000000e+00> : vector<4x8xf32>
    %43 = vector.multi_reduction <add>, %42, %cst_27 [2] : vector<4x8x16xf32> to vector<4x8xf32>
    %44 = vector.shape_cast %43 : vector<4x8xf32> to vector<4x8x1xf32>
    %45 = tpu.reciprocal %44 {approx = true} : vector<4x8x1xf32> -> vector<4x8x1xf32>
    %46 = vector.broadcast %45 : vector<4x8x1xf32> to vector<4x8x16xf32>
    %47 = arith.mulf %42, %46 : vector<4x8x16xf32>
    %c0_28 = arith.constant 0 : index
    %c0_29 = arith.constant 0 : index
    %c0_30 = arith.constant 0 : index
    %48 = vector.load %arg11[%c0_28, %c0_29, %c0_30] : memref<4x8x16xf32, #tpu.memory_space<vmem>>, vector<4x8x16xf32>
    tpu.vector_store %arg11[%c0_28, %c0_29, %c0_30], %47 {strides = array<i32>} : memref<4x8x16xf32, #tpu.memory_space<vmem>>, vector<4x8x16xf32>,
    return
  }
  func.func @transform_0(%arg0: i32, %arg1: i32) -> (i32, i32, i32) {
    %c0_i32 = arith.constant 0 : i32
    %c0_i32_0 = arith.constant 0 : i32
    return %arg0, %arg1, %c0_i32 : i32, i32, i32
  }
  func.func @transform_1(%arg0: i32, %arg1: i32) -> (i32, i32, i32) {
    %c0_i32 = arith.constant 0 : i32
    %c0_i32_0 = arith.constant 0 : i32
    %c0_i32_1 = arith.constant 0 : i32
    return %arg0, %c0_i32, %c0_i32_0 : i32, i32, i32
  }
  func.func @transform_2(%arg0: i32, %arg1: i32) -> (i32, i32, i32) {
    %c0_i32 = arith.constant 0 : i32
    %c0_i32_0 = arith.constant 0 : i32
    %c0_i32_1 = arith.constant 0 : i32
    return %arg0, %c0_i32, %c0_i32_0 : i32, i32, i32
  }
  func.func @transform_3(%arg0: i32, %arg1: i32) -> (i32, i32, i32) {
    %c0_i32 = arith.constant 0 : i32
    %c0_i32_0 = arith.constant 0 : i32
    %c0_i32_1 = arith.constant 0 : i32
    return %arg0, %c0_i32, %c0_i32_0 : i32, i32, i32
  }
  func.func @transform_4(%arg0: i32, %arg1: i32) -> (i32, i32) {
    %c0_i32 = arith.constant 0 : i32
    %c0_i32_0 = arith.constant 0 : i32
    %c0_i32_1 = arith.constant 0 : i32
    return %c0_i32, %c0_i32_0 : i32, i32
  }
  func.func @transform_5(%arg0: i32, %arg1: i32) -> (i32, i32) {
    %c0_i32 = arith.constant 0 : i32
    %c0_i32_0 = arith.constant 0 : i32
    %c0_i32_1 = arith.constant 0 : i32
    return %c0_i32, %c0_i32_0 : i32, i32
  }
  func.func @transform_6(%arg0: i32, %arg1: i32) -> (i32, i32) {
    %c0_i32 = arith.constant 0 : i32
    %c0_i32_0 = arith.constant 0 : i32
    %c0_i32_1 = arith.constant 0 : i32
    return %c0_i32, %c0_i32_0 : i32, i32
  }
  func.func @transform_7(%arg0: i32, %arg1: i32) -> (i32, i32) {
    %c0_i32 = arith.constant 0 : i32
    %c0_i32_0 = arith.constant 0 : i32
    %c0_i32_1 = arith.constant 0 : i32
    return %c0_i32, %c0_i32_0 : i32, i32
  }
  func.func @transform_8(%arg0: i32, %arg1: i32) -> (i32, i32) {
    %c0_i32 = arith.constant 0 : i32
    %c0_i32_0 = arith.constant 0 : i32
    %c0_i32_1 = arith.constant 0 : i32
    return %c0_i32, %c0_i32_0 : i32, i32
  }
  func.func @transform_9(%arg0: i32, %arg1: i32) -> (i32, i32, i32) {
    %c0_i32 = arith.constant 0 : i32
    %c0_i32_0 = arith.constant 0 : i32
    return %arg0, %arg1, %c0_i32 : i32, i32, i32
  }
}

</mosaic_0001>

<bundles_post_ra>
// kernel: tpu_custom_call.1
= control target key start
LH: loop header
LB: loop body
LE: loop exit
PB: predicated region body
PF: predicated region fallthrough
CT: control target
= control target key end

     0   :  { %s2092_s0 = inlined_call_operand.hbm [shape: bf16[8,8,16], index: 0, kind: input, shape index: {}]   ;;  %s2093_s1 = inlined_call_operand.hbm [shape: bf16[8,16,16], index: 1, kind: input, shape index: {}]   ;;  %s2094_s2 = inlined_call_operand.hbm [shape: f32[8,1,16], index: 2, kind: input, shape index: {}]   ;;  %s2095_s3 = inlined_call_operand.hbm [shape: f32[8,1,16], index: 3, kind: input, shape index: {}]   ;;  %s2096_s4 = inlined_call_operand.hbm [shape: bf16[16,32], index: 4, kind: input, shape index: {}]   ;;  %s2097_s5 = inlined_call_operand.vmem [shape: f32[1,32], index: 5, kind: input, shape index: {}]   ;;  %s2098_s6 = inlined_call_operand.vmem [shape: bf16[16,32], index: 6, kind: input, shape index: {}]   ;;  %s2099_s7 = inlined_call_operand.vmem [shape: f32[1,32], index: 7, kind: input, shape index: {}]   ;;  %s2100_s8 = inlined_call_operand.vmem [shape: f32[1,32], index: 8, kind: input, shape index: {}]   ;;  %s2101_s9 = inlined_call_operand.hbm [shape: f32[8,8,16], index: 9, kind: output, shape index: {}]  }
   0x1   :  { %2115 = sst [smem:[#allocation24_spill]] %s2093_s1 }
   0x2   :  { %2116 = sst [smem:[#allocation25_spill]] %s2096_s4 }
   0x3   :  { %2117 = sst [smem:[#allocation26_spill]] %s2097_s5 }
   0x4   :  { %2118 = sst [smem:[#allocation27_spill]] %s2101_s9 }
   0x5   :  { %14 = vsyncpa [#allocation3], 0 }
   0x6   :  { %16 = vsyncpa [#allocation3 + $0x1], 0 }
   0x7   :  { %17 = vsyncpa [#allocation6], 0 }
   0x8   :  { %19 = vsyncpa [#allocation6 + $0x1], 0 }
   0x9   :  { %20 = vsyncpa [#allocation9], 0 }
   0xa   :  { %22 = vsyncpa [#allocation9 + $0x1], 0 }
   0xb   :  { %23 = vsyncpa [#allocation4], 0 }
   0xc   :  { %25 = vsyncpa [#allocation4 + $0x1], 0  ;;  %s1757_s30 = smov 0   ;;  %s1759_s10 = smov 0  }
   0xd   :  { %s1761_s11 = smov 0   ;;  %s1763_s12 = smov 0  }
   0xe   :  { %s1765_s13 = smov 0   ;;  %s1767_s14 = smov 0  }
   0xf LB: > { %2119 = sst [smem:[#allocation17_spill]] %s1672_s30  ;;  %s1788_s15 = sadd.s32 4294967295, %s1692_s14   ;;  %s1692_s14 = sphi %s1767_s14, %s31_s14   ;;  %s1688_s13 = sphi %s1765_s13, %s2157_s13   ;;  %s1684_s12 = sphi %s1763_s12, %s2156_s12   ;;  %s1680_s11 = sphi %s1761_s11, %s2152_s11   ;;  %s1676_s10 = sphi %s1759_s10, %s2155_s10   ;;  %s1672_s30 = sphi %s1757_s30, %s2154_s30  }
  0x10   : > { %2120 = sst [smem:[#allocation18_spill]] %s1680_s11  ;;  %s1257_s16 = sadd.s32 4294967294, %s1692_s14  }
  0x11   : > { %2121 = sst [smem:[#allocation19_spill]] %s1684_s12  ;;  %p59_p0 = scmp.ne.s32.totalorder %s1680_s11, %s1676_s10 }
  0x12   : > { %p60_p1 = scmp.eq.s32.totalorder %s1692_s14, 0  ;;  %p65_p2 = scmp.ne.s32.totalorder %s1676_s10, %s1672_s30 }
  0x13   : > { %p2102_p3 = scmp.eq.s32.totalorder %s1788_s15, 0  ;;  %p274_p4 = scmp.eq.s32.totalorder %s1788_s15, 1 }
  0x14   : > { %p1799_p5 = por %p60_p1, %p59_p0  ;;  %p280_p6 = scmp.eq.s32.totalorder %s1257_s16, 1 }
  0x15   : > { %p1805_p7 = por %p2102_p3, %p65_p2  ;;  %p1809_p8 = por %p274_p4, %p59_p0 }
  0x16   : > { %p1813_p9 = por %p280_p6, %p65_p2  ;;  %p1258_p10 = scmp.ge.s32.totalorder %s1692_s14, 1 }
  0x17   : > { %s2124_s20 = scalar_select %p1809_p8, 1, 0 }
  0x18   : > { %s2126_s21 = scalar_select %p1813_p9, 1, 0 }
  0x19   : > { %2125 = sst [smem:[#allocation20_spill]] %s2124_s20  ;;  %p287_p11 = scmp.lt.s32.totalorder %s1692_s14, 3 }
  0x1a   : > { %2127 = sst [smem:[#allocation21_spill]] %s2126_s21  ;;  %s1694_s23 = smov [#allocation10]  }
  0x1b   : > { %p1819_p12 = pnand %p1258_p10, %p287_p11  ;;  %s299_s24 = sshll.u32 %s1694_s23, 4  ;;  %s300_s24 = int_to_ptr.vmem [resolvable:$true] %s299_s24 }
  0x1c   : > { %s43_s26 = sadd.s32 1, %s1688_s13  ;;  %s1835_s27 = sand.u32 1, %s1680_s11  }
  0x1d   : > { %p1355_p13 = pneg %p1819_p12  ;;  %p1837_p2 = scmp.ge.s32.totalorder %s43_s26, 2 }
  0x1e   : > { %s1473_s29 = scalar_lea.vmem %s300_s24, 128  ;;  %p1481_p1 = scmp.lt.s32.totalorder %s300_s24, %s300_s24 }
  0x1f   : > { %p1829_p4 = pnand %p1355_p13, %p2102_p3  ;;  %p1474_p10 = scmp.ne.s32.totalorder %s300_s24, %s1473_s29 }
  0x20   : > { %p1482_p9 = scmp.lt.s32.totalorder %s1473_s29, %s1473_s29 }
  0x21   : > { %p1464_p6 = pneg %p1829_p4 }
  0x22   : > { %p1483_p13 = por %p1482_p9, %p1481_p1 }
  0x23   : > { %p1476_p11 = pnand %p1474_p10, %p1464_p6 }
  0x25   : > { %p1477_p0 = pneg %p1476_p11 }
  0x27   : > { %p1484_p3 = pnand %p1483_p13, %p1477_p0 }
  0x29   : > { %1487 = shalt.err (!%p1484_p3)
}
  0x2a   : > { %s2108_s16 = smov 64   ;;  %s2110_s23 = smov 4  }
  0x2b   : > { %s2131_s4 = sld [smem:[#allocation25_spill]]  ;;  %s2159_s26 = smov (%p1837_p2, %s43_s26), 0 }
  0x2c   : > { %2132 = sst [smem:[#allocation22_spill]] %s2159_s26  ;;  %p2133_p3 = scmp.lt.s32.totalorder %s1692_s14, 2 }
  0x2d   : > { %s2113_s25 = sand.u32 1, %s1692_s14   ;;  %s47_s30 = ssub.s32 %s1688_s13, %s2159_s26 }
  0x2e   : > { %p1859_p9 = pnand %p2133_p3, %p1799_p5  ;;  %p50_p0 = scmp.eq.s32.totalorder %s47_s30, 0 }
  0x2f   : > { %s1264_s9 = sshll.u32 %s1835_s27, 5  ;;  %s1313_s20 = sshll.u32 %s1688_s13, 9 }
  0x30   : > { %s2135_s12 = sadd.s32 1, %s1680_s11  ;;  %s2137_s1 = sld [smem:[#allocation24_spill]] }
  0x31   : > { %1358 = dma.hbm_to_vmem [thread:$0]  (!%p1829_p4), %s2131_s4, 128, %s300_s24, [#allocation9], %s2108_s16, %s2108_s16, %s2110_s23  }
  0x32   : > { %s1871_s17 = scalar_select %p50_p0, %s1680_s11, %s2135_s12  }
  0x33   : > { %s351_s29 = scalar_lea.vmem [#allocation5], %s1264_s9  ;;  %s1878_s23 = scalar_lea.sflag [#allocation6], %s2113_s25 }
  0x34   : > { %2136 = sst [smem:[#allocation23_spill]] %s1871_s17  ;;  %s359_s16 = sshll.u32 %s351_s29, 4  ;;  %s360_s16 = int_to_ptr.vmem [resolvable:$true] %s359_s16 }
  0x35   : > { %p1490_p5 = pneg %p1859_p9  ;;  %s1501_s4 = scalar_lea.vmem %s360_s16, 512 }
  0x36   : > { %s358_s18 = scalar_lea.hbm %s2137_s1, %s1313_s20  ;;  %p1502_p1 = scmp.ne.s32.totalorder %s360_s16, %s1501_s4 }
  0x37   : > { %s1697_s30 = smov [#allocation5]  }
  0x38   : > { %p1504_p4 = pnand %p1502_p1, %p1490_p5  ;;  %s1506_s12 = sshll.u32 %s1697_s30, 4  ;;  %s1507_s12 = int_to_ptr.vmem [resolvable:$false] %s1506_s12 }
  0x39   : > { %s1508_s26 = scalar_lea.vmem %s1507_s12, 1024  ;;  %p1509_p6 = scmp.lt.s32.totalorder %s360_s16, %s1507_s12 }
  0x3a   : > { %p1505_p2 = pneg %p1504_p4  ;;  %p1510_p10 = scmp.lt.s32.totalorder %s1508_s26, %s1501_s4 }
  0x3c   : > { %p1511_p11 = por %p1510_p10, %p1509_p6 }
  0x3e   : > { %p1512_p13 = pnand %p1511_p11, %p1505_p2 }
  0x40   : > { %1515 = shalt.err (!%p1512_p13)
}
  0x41   : > { %s2138_s9 = smov 4   ;;  %s2139_s20 = smov 64  }
  0x42   : > { %1365 = dma.hbm_to_vmem [thread:$0]  (!%p1859_p9), %s358_s18, 512, %s360_s16, %s1878_s23, %s2139_s20, %s2139_s20, %s2138_s9  }
  0x43   : > { %s1261_s24 = sshll.u32 %s1835_s27, 4  ;;  %s1311_s28 = sshll.u32 %s1688_s13, 8 }
  0x44   : > { %s336_s4 = scalar_lea.hbm %s2092_s0, %s1311_s28  ;;  %s329_s26 = scalar_lea.vmem [#allocation2], %s1261_s24 }
  0x45   : > { %s337_s12 = sshll.u32 %s329_s26, 4  ;;  %s1268_s25 = sshll.u32 %s1835_s27, 2  ;;  %s338_s12 = int_to_ptr.vmem [resolvable:$true] %s337_s12 }
  0x46   : > { %s326_s1 = scalar_lea.sflag [#allocation3], %s1835_s27  ;;  %s1529_s17 = scalar_lea.vmem %s338_s12, 256 }
  0x47   : > { %p1530_p3 = scmp.ne.s32.totalorder %s338_s12, %s1529_s17  ;;  %s1698_s11 = smov [#allocation2]  }
  0x48   : > { %s1534_s5 = sshll.u32 %s1698_s11, 4  ;;  %s1535_s5 = int_to_ptr.vmem [resolvable:$false] %s1534_s5 }
  0x49   : > { %p1532_p0 = pnand %p1530_p3, %p1490_p5  ;;  %s1536_s16 = scalar_lea.vmem %s1535_s5, 512 }
  0x4a   : > { %p1537_p4 = scmp.lt.s32.totalorder %s338_s12, %s1535_s5  ;;  %p1538_p2 = scmp.lt.s32.totalorder %s1536_s16, %s1529_s17 }
  0x4b   : > { %p1533_p1 = pneg %p1532_p0 }
  0x4c   : > { %p1539_p6 = por %p1538_p2, %p1537_p4 }
  0x4e   : > { %p1540_p10 = pnand %p1539_p6, %p1533_p1 }
  0x50   : > { %1543 = shalt.err (!%p1540_p10)
}
  0x51   : > { %1362 = dma.hbm_to_vmem [thread:$0]  (!%p1859_p9), %s336_s4, 256, %s338_s12, %s326_s1, %s2139_s20, %s2139_s20, %s2138_s9  }
  0x52   : > { %s1314_s18 = sshll.u32 %s1688_s13, 6  ;;  %s373_s24 = scalar_lea.vmem [#allocation7], %s1268_s25 }
  0x53   : > { %s380_s11 = sshll.u32 %s373_s24, 4  ;;  %s379_s5 = scalar_lea.hbm %s2094_s2, %s1314_s18  ;;  %s381_s11 = int_to_ptr.vmem [resolvable:$true] %s380_s11 }
  0x54   : > { %s1557_s17 = scalar_lea.vmem %s381_s11, 64  ;;  %s1699_s30 = smov [#allocation7]  }
  0x55   : > { %p1558_p11 = scmp.ne.s32.totalorder %s381_s11, %s1557_s17  ;;  %s1562_s26 = sshll.u32 %s1699_s30, 4  ;;  %s1563_s26 = int_to_ptr.vmem [resolvable:$false] %s1562_s26 }
  0x56   : > { %s1564_s16 = scalar_lea.vmem %s1563_s26, 128  ;;  %p1565_p0 = scmp.lt.s32.totalorder %s381_s11, %s1563_s26 }
  0x57   : > { %p1560_p13 = pnand %p1558_p11, %p1490_p5  ;;  %p1566_p1 = scmp.lt.s32.totalorder %s1564_s16, %s1557_s17 }
  0x59   : > { %p1561_p3 = pneg %p1560_p13  ;;  %p1567_p4 = por %p1566_p1, %p1565_p0 }
  0x5b   : > { %p1568_p2 = pnand %p1567_p4, %p1561_p3 }
  0x5d   : > { %1571 = shalt.err (!%p1568_p2)
}
  0x5e   : > { %s1700_s1 = smov 16   ;;  %s1701_s9 = smov 1  }
  0x5f   : > { %1368 = dma.hbm_to_vmem [thread:$0]  (!%p1859_p9), %s379_s5, 64, %s381_s11, %s1878_s23, %s1700_s1, %s1700_s1, %s1701_s9  }
  0x60   : > { %s400_s12 = scalar_lea.hbm %s2095_s3, %s1314_s18  ;;  %s394_s24 = scalar_lea.vmem [#allocation8], %s1268_s25 }
  0x61   : > { %s401_s28 = sshll.u32 %s394_s24, 4  ;;  %s2140_s29 = sand.u32 1, %s1692_s14   ;;  %s402_s28 = int_to_ptr.vmem [resolvable:$true] %s401_s28 }
  0x62   : > { %s391_s17 = scalar_lea.sflag [#allocation9], %s2140_s29  ;;  %s1585_s30 = scalar_lea.vmem %s402_s28, 64 }
  0x63   : > { %p1586_p6 = scmp.ne.s32.totalorder %s402_s28, %s1585_s30  ;;  %s1702_s26 = smov [#allocation8]  }
  0x64   : > { %s1590_s16 = sshll.u32 %s1702_s26, 4  ;;  %s1591_s16 = int_to_ptr.vmem [resolvable:$false] %s1590_s16 }
  0x65   : > { %p1588_p10 = pnand %p1586_p6, %p1490_p5  ;;  %s1592_s23 = scalar_lea.vmem %s1591_s16, 128 }
  0x66   : > { %p1593_p13 = scmp.lt.s32.totalorder %s402_s28, %s1591_s16  ;;  %p1594_p3 = scmp.lt.s32.totalorder %s1592_s23, %s1585_s30 }
  0x67   : > { %p1589_p11 = pneg %p1588_p10 }
  0x68   : > { %p1595_p0 = por %p1594_p3, %p1593_p13 }
  0x6a   : > { %p1596_p1 = pnand %p1595_p0, %p1589_p11 }
  0x6c   : > { %1599 = shalt.err (!%p1596_p1)
}
  0x6d   : > { %1371 = dma.hbm_to_vmem [thread:$0]  (!%p1859_p9), %s400_s12, 64, %s402_s28, %s391_s17, %s1700_s1, %s1700_s1, %s1701_s9  }
  0x6e   : > { %413 = sbr.rel (%p1819_p12) target bundleno = 955 (0x3bb), region = 56  ;;  %s1933_s27 = sand.u32 (!%p1819_p12), 1, %s1676_s10  }
  0x6f   : > { %s1275_s25 = sshll.u32 (!%p1819_p12), %s1933_s27, 4  ;;  %s416_s18 = scalar_lea.sflag (!%p1819_p12), [#allocation3], %s1933_s27 }
  0x70   : > { %s419_s11 = scalar_lea.vmem (!%p1819_p12), [#allocation2], %s1275_s25 }
  0x73   : > { %1651 = dma.done.wait (%p1805_p7), %s416_s18, 256  }
  0x74   : > { %1653 = vsyncadd (%p1805_p7), %s416_s18, 4294967040  ;;  %s424_s21 = sand.u32 1, %s1788_s15   ;;  %s1276_s22 = sshll.u32 %s1933_s27, 5 }
  0x75   : > { %s425_s5 = scalar_lea.sflag [#allocation6], %s424_s21  ;;  %s428_s1 = scalar_lea.vmem [#allocation5], %s1276_s22 }
  0x76   : > { %1655 = dma.done.wait (%p1805_p7), %s425_s5, 576  }
  0x77   : > { %1657 = vsyncadd (%p1805_p7), %s425_s5, 4294966720  ;;  %s1277_s9 = sshll.u32 %s1933_s27, 2  ;;  %s443_s4 = scalar_lea.sflag [#allocation9], %s424_s21 }
  0x78   : > { %s1950_s20 = scalar_lea.vmem [#allocation7], %s1277_s9  ;;  %s1952_s12 = scalar_lea.vmem [#allocation8], %s1277_s9 }
  0x79   : > { %1659 = dma.done.wait (%p1805_p7), %s443_s4, 64  }
  0x7a   : > { %1661 = vsyncadd (%p1805_p7), %s443_s4, 4294967232  ;;  %p2141_p12 = scmp.eq.s32.totalorder %s1788_s15, 0 }
  0x7c   : > { %1663 = dma.done.wait (%p2141_p12), [#allocation9], 128   ;;  %p2142_p9 = pmov %p2141_p12 }
  0x7d   : > { %v1438_v0 = vld [vmem:[%s2098_s6] sm:$0xff]   ;;  %vm543_vm0 = vcmask 130048   ;;  %v1440_v2 = vld [vmem:[%s428_s1 + $0x8] sm:$0xff]   ;;  %v1441_v3 = vld [vmem:[%s428_s1 + $0x10] sm:$0xff]   ;;  %vm734_vm1 = vcmask 261120   ;;  %s2143_s16 = sld [smem:[#allocation26_spill]] }
  0x7e   : > { %1665 = vsyncadd (%p2142_p9), [#allocation9], 4294967168  ;;  %v1439_v1 = vld [vmem:[%s428_s1] sm:$0xff]   ;;  %1331 = vmatprep.subr.bf16.mxu1 %v1438_v0  ;;  %v1443_v4 = vld [vmem:[#allocation10] sm:$0xff]   ;;  %vm966_vm2 = vcmask 130112   ;;  %s2144_s23 = sld [smem:[#allocation19_spill]] }
  0x7f   : > { %1332 = vmatpush3.bf16.msra.mxu1 %v1438_v0  ;;  %1333 = vmatprep.mubr.msk.bf16.mxu1 %vm543_vm0, %v1439_v1  ;;  %v1444_v5 = vld [vmem:[%s419_s11] sm:$0xff]   ;;  %v1445_v6 = vld [vmem:[%s419_s11 + $0x8] sm:$0xff]   ;;  %s499_s25 = scalar_lea.vmem [#allocation11], %s1276_s22 }
  0x80   : > { %1325 = vmatprep.subr.bf16.mxu0 %v1443_v4  ;;  %1327 = vmatprep.mubr.msk.bf16.mxu0 %vm543_vm0, %v1444_v5  ;;  %v1970_v7 = vld [vmem:[%s1950_s20] ss:$0 sm:$0xff]  ;;  %v1442_v8 = vld [vmem:[%s428_s1 + $0x18] sm:$0xff]   ;;  %v1975_v9 = vld [vmem:[%s1950_s20 + $0x1] ss:$0 sm:$0xff]  ;;  %s1096_s21 = sshll.u32 %s499_s25, 4  ;;  %s2043_s21 = int_to_ptr.vmem [resolvable:$true] %s1096_s21 }
  0x81   : > { %1326 = vmatpush3.bf16.msra.mxu0 %v1443_v4  ;;  %808 = vbcast.lane.b32.xlu1 %v1970_v7, 264  ;;  %v1979_v10 = vld [vmem:[%s1950_s20 + $0x2] ss:$0 sm:$0xff]  ;;  %v1985_v11 = vld [vmem:[%s1950_s20 + $0x3] ss:$0 sm:$0xff]  ;;  %s2146_s1 = sld [smem:[#allocation27_spill]] }
  0x82   : > { %1334 = vmatmul.mubr.msk.bf16.vlgmr.msra.gmra.mxu1 %vm543_vm0, %v1440_v2  ;;  %804 = vbcast.lane.b32.xlu0 %v1970_v7, 256  ;;  %v1302_v12 = vld [vmem:[%s1952_s12] ss:$0 sm:$0xff]  ;;  %v1303_v13 = vld [vmem:[%s1952_s12 + $0x1] ss:$0 sm:$0xff]  ;;  %s1082_s20 = scalar_lea.sflag [#allocation4], %s1933_s27 }
  0x83   : > { %1337 = vmatprep.mubr.msk.bf16.mxu1 %vm543_vm0, %v1441_v3  ;;  %v1304_v14 = vld [vmem:[%s1952_s12 + $0x2] ss:$0 sm:$0xff]  ;;  %v1287_v15 = vld [vmem:[%s2099_s7] ss:$0 sm:$0xff]  ;;  %s1600_s4 = scalar_lea.vmem %s2043_s21, 512 }
  0x84   : > { %1328 = vmatmul.mubr.msk.bf16.vlgmr.msra.gmra.mxu0 %vm543_vm0, %v1445_v6  ;;  %v1297_v19 = vld [vmem:[%s2100_s8] ss:$0 sm:$0xff]  ;;  %s1316_s11 = sshll.u32 %s2144_s23, 9  ;;  %p1601_p7 = scmp.ne.s32.totalorder %s2043_s21, %s1600_s4 }
  0x85   : > { %811 = vbcast.lane.b32.xlu1 %v1975_v9, 256  ;;  %v1281_v27 = vld [vmem:[%s2143_s16] ss:$0 sm:$0xff] }
  0x86   : > { %818 = vbcast.lane.b32.xlu0 %v1979_v10, 256  ;;  %p1602_p5 = pnand %p1601_p7, %p1809_p8 }
  0x87   : > { %s2041_s9 = scalar_lea.hbm %s2146_s1, %s1316_s11 }
  0x88   : > { %p1603_p4 = pneg %p1602_p5 }
  0x89   : > { %815 = vbcast.lane.b32.xlu1 %v1975_v9, 264 }
  0x8a   : > { %1338 = vmatmul.mubr.msk.bf16.gmra.mxu1 %vm543_vm0, %v1442_v8  ;;  %825 = vbcast.lane.b32.xlu0 %v1985_v11, 256 }
  0x8d   : > { %822 = vbcast.lane.b32.xlu1 %v1979_v10, 264 }
  0x8e   : > { %872 = vbcast.lane.b32.xlu0 %v1302_v12, 256 }
  0x91   : > { %829 = vbcast.lane.b32.xlu1 %v1985_v11, 264 }
  0x92   : > { %879 = vbcast.lane.b32.xlu0 %v1303_v13, 256 }
  0x95   : > { %876 = vbcast.lane.b32.xlu1 %v1302_v12, 264 }
  0x96   : > { %886 = vbcast.lane.b32.xlu0 %v1304_v14, 256 }
  0x99   : > { %883 = vbcast.lane.b32.xlu1 %v1303_v13, 264 }
  0x9d   : > { %890 = vbcast.lane.b32.xlu1 %v1304_v14, 264 }
 0x142   : > { %v1335_v16 = vpop.f32.mrf.mxu1 }
 0x143   : > { %v693_v17 = vadd.f32 %v1335_v16, %v1287_v15 }
 0x144   : > { %v684_v18 = vpop.f32.mrf.mxu1  ;;  %v1329_v26 = vpop.f32.mrf.mxu0 }
 0x145   : > { %v717_v20 = vmax.f32 %v693_v17, 0.0  ;;  %v685_v21 = vadd.f32 %v1287_v15, %v684_v18  ;;  %v593_v29 = vadd.f32 %v1329_v26, %v1281_v27  ;;  %v1703_v18 = vmov 0  }
 0x146   : > { %v1336_v22 = vpop.f32.mrf.mxu1  ;;  %v584_v34 = vpop.f32.mrf.mxu0  ;;  %1437 = vset.pattern.permute.xlu1 %v1703_v18  ;;  %1436 = vset.pattern.permute.xlu0 %v1703_v18 }
 0x147   : > { %v715_v23 = vmax.f32 %v685_v21, 0.0  ;;  %v696_v24 = vadd.f32 %v1336_v22, %v1287_v15  ;;  %v749_v25 = vmul.f32 %v1297_v19, %v717_v20  ;;  %v601_v36 = vmax.f32 %v593_v29, 0.0  ;;  %v1305_v20 = vld [vmem:[%s1952_s12 + $0x3] ss:$0 sm:$0xff]  ;;  %v809_v21 = vpop.permute.xlu1 %808  ;;  %s1704_s12 = smov [#allocation11]  }
 0x148   : > { %v687_v28 = vpop.f32.mrf.mxu1  ;;  %v585_v37 = vadd.f32 %v1281_v27, %v584_v34  ;;  %v1330_v42 = vpop.f32.mrf.mxu0  ;;  %s1604_s24 = sshll.u32 %s1704_s12, 4  ;;  %s1605_s24 = int_to_ptr.vmem [resolvable:$false] %s1604_s24 }
 0x149   : > { %v718_v30 = vmax.f32 %v696_v24, 0.0  ;;  %v688_v31 = vadd.f32 %v1287_v15, %v687_v28  ;;  %v761_v32 = vsel %vm734_vm1, %v749_v25, 0.0  ;;  %v747_v33 = vmul.f32 %v1297_v19, %v715_v23  ;;  %v805_v23 = vpop.permute.xlu0 %804  ;;  %s1606_s28 = scalar_lea.vmem %s1605_s24, 1024  ;;  %p1607_p2 = scmp.lt.s32.totalorder %s2043_s21, %s1605_s24 }
 0x14a   : > { %762 = vadd.xlane.f32.xlu1 %v761_v32  ;;  %v1339_v35 = vpop.f32.mrf.mxu1  ;;  %v599_v44 = vmax.f32 %v585_v37, 0.0  ;;  %v596_v45 = vadd.f32 %v1330_v42, %v1281_v27  ;;  %v732_v46 = vmul.f32 %v1297_v19, %v601_v36  ;;  %v587_v51 = vpop.f32.mrf.mxu0  ;;  %p1608_p6 = scmp.lt.s32.totalorder %s1606_s28, %s1600_s4 }
 0x14b   : > { %v716_v38 = vmax.f32 %v688_v31, 0.0  ;;  %v709_v39 = vadd.f32 %v1339_v35, %v1287_v15  ;;  %v755_v40 = vsel %vm734_vm1, %v747_v33, 0.0  ;;  %v750_v41 = vmul.f32 %v1297_v19, %v718_v30  ;;  %v812_v22 = vpop.permute.xlu1 %811 }
 0x14c   : > { %v700_v43 = vpop.f32.mrf.mxu1  ;;  %756 = vadd.xlane.f32.xlu0 %v755_v40  ;;  %v602_v53 = vmax.f32 %v596_v45, 0.0  ;;  %v588_v54 = vadd.f32 %v1281_v27, %v587_v51  ;;  %v730_v55 = vmul.f32 %v1297_v19, %v599_v44  ;;  %v741_v56 = vsel %vm734_vm1, %v732_v46, 0.0  ;;  %p1609_p10 = por %p1608_p6, %p1607_p2 }
 0x14d   : > { %v721_v47 = vmax.f32 %v709_v39, 0.0  ;;  %v701_v48 = vadd.f32 %v1287_v15, %v700_v43  ;;  %v764_v49 = vsel %vm734_vm1, %v750_v41, 0.0  ;;  %v748_v50 = vmul.f32 %v1297_v19, %v716_v38  ;;  %v819_v25 = vpop.permute.xlu0 %818 }
 0x14e   : > { %765 = vadd.xlane.f32.xlu1 %v764_v49  ;;  %v1340_v52 = vpop.f32.mrf.mxu1  ;;  %v600_v62 = vmax.f32 %v588_v54, 0.0  ;;  %v735_v63 = vsel %vm734_vm1, %v730_v55, 0.0  ;;  %v733_v0 = vmul.f32 %v1297_v19, %v602_v53  ;;  %p1610_p11 = pnand %p1609_p10, %p1603_p4 }
 0x14f   : > { %v719_v57 = vmax.f32 %v701_v48, 0.0  ;;  %v712_v58 = vadd.f32 %v1340_v52, %v1287_v15  ;;  %v758_v59 = vsel %vm734_vm1, %v748_v50, 0.0  ;;  %v753_v60 = vmul.f32 %v1297_v19, %v721_v47 }
 0x150   : > { %v703_v61 = vpop.f32.mrf.mxu1  ;;  %759 = vadd.xlane.f32.xlu0 %v758_v59  ;;  %v731_v4 = vmul.f32 %v1297_v19, %v600_v62  ;;  %v744_v5 = vsel %vm734_vm1, %v733_v0, 0.0 }
 0x151   : > { %v722_v1 = vmax.f32 %v712_v58, 0.0  ;;  %v704_v2 = vadd.f32 %v1287_v15, %v703_v61  ;;  %v773_v3 = vsel %vm734_vm1, %v753_v60, 0.0  ;;  %v751_v12 = vmul.f32 %v1297_v19, %v719_v57  ;;  %v826_v27 = vpop.permute.xlu0 %825 }
 0x152   : > { %v738_v13 = vsel %vm734_vm1, %v731_v4, 0.0  ;;  %v955_v61 = vlaneseq }
 0x153   : > { %v720_v6 = vmax.f32 %v704_v2, 0.0  ;;  %v754_v8 = vmul.f32 %v1297_v19, %v722_v1  ;;  %v767_v17 = vsel %vm734_vm1, %v751_v12, 0.0 }
 0x154   : > { %774 = vadd.xlane.f32.xlu0 %v773_v3  ;;  %v956_v62 = vand.u32 127, %v955_v61  ;;  %v958_v1 = vshrl.u32 %v955_v61, 7 }
 0x155   : > { %v776_v14 = vsel %vm734_vm1, %v754_v8, 0.0  ;;  %v752_v16 = vmul.f32 %v1297_v19, %v720_v6  ;;  %v816_v19 = vpop.permute.xlu1 %815  ;;  %v873_v29 = vpop.permute.xlu0 %872 }
 0x156   : > { %777 = vadd.xlane.f32.xlu1 %v776_v14  ;;  %v961_v2 = vadd.s32 4294967288, %v956_v62  ;;  %v959_v4 = vsub.s32 %v956_v62, %v958_v1 }
 0x157   : > { %v770_v15 = vsel %vm734_vm1, %v752_v16, 0.0 }
 0x158   : > { %768 = vadd.xlane.f32.xlu0 %v767_v17 }
 0x159   : > { %v823_v24 = vpop.permute.xlu1 %822  ;;  %v880_v31 = vpop.permute.xlu0 %879 }
 0x15a   : > { %771 = vadd.xlane.f32.xlu1 %v770_v15 }
 0x15d   : > { %v830_v26 = vpop.permute.xlu1 %829  ;;  %v887_v33 = vpop.permute.xlu0 %886 }
 0x161   : > { %v877_v28 = vpop.permute.xlu1 %876 }
 0x165   : > { %v884_v30 = vpop.permute.xlu1 %883 }
 0x169   : > { %v891_v32 = vpop.permute.xlu1 %890 }
 0x16b   : > { %897 = vbcast.lane.b32.xlu1 %v1305_v20, 264 }
 0x16e   : > { %893 = vbcast.lane.b32.xlu0 %v1305_v20, 256 }
 0x18d   : > { %736 = vadd.xlane.f32.xlu0 %v735_v63 }
 0x18f   : > { %739 = vadd.xlane.f32.xlu1 %v738_v13 }
 0x191   : > { %742 = vadd.xlane.f32.xlu0 %v741_v56 }
 0x195   : > { %745 = vadd.xlane.f32.xlu0 %v744_v5  ;;  %v964_v5 = vsub.s32 %v961_v2, %v958_v1 }
 0x1d3   : > { %v763_v34 = vpop.xlane.xlu1 %762 }
 0x1d4   : > { %v841_v35 = vmul.f32 %v812_v22, %v763_v34 }
 0x1d5   : > { %v757_v36 = vpop.xlane.xlu0 %756 }
 0x1d6   : > { %v909_v37 = vadd.f32 %v880_v31, %v841_v35  ;;  %v839_v38 = vmul.f32 %v805_v23, %v757_v36 }
 0x1d7   : > { %v766_v39 = vpop.xlane.xlu1 %765 }
 0x1d8   : > { %v907_v40 = vadd.f32 %v873_v29, %v839_v38  ;;  %v842_v41 = vmul.f32 %v816_v19, %v766_v39  ;;  %938 = vperm.xlu1 %1437, %v909_v37  }
 0x1d9   : > { %v760_v42 = vpop.xlane.xlu0 %759 }
 0x1da   : > { %v910_v43 = vadd.f32 %v884_v30, %v842_v41  ;;  %v840_v44 = vmul.f32 %v809_v21, %v760_v42  ;;  %932 = vperm.xlu0 %1436, %v907_v40  }
 0x1dc   : > { %941 = vperm.xlu1 %1437, %v910_v43   ;;  %v908_v46 = vadd.f32 %v877_v28, %v840_v44 }
 0x1dd   : > { %v775_v45 = vpop.xlane.xlu0 %774 }
 0x1de   : > { %v845_v49 = vmul.f32 %v826_v27, %v775_v45 }
 0x1df   : > { %v778_v47 = vpop.xlane.xlu1 %777 }
 0x1e0   : > { %935 = vperm.xlu1 %1437, %v908_v46   ;;  %v846_v58 = vmul.f32 %v830_v26, %v778_v47 }
 0x1e1   : > { %v769_v48 = vpop.xlane.xlu0 %768 }
 0x1e2   : > { %v843_v51 = vmul.f32 %v819_v25, %v769_v48 }
 0x1e3   : > { %v772_v53 = vpop.xlane.xlu1 %771 }
 0x1e4   : > { %v911_v54 = vadd.f32 %v887_v33, %v843_v51  ;;  %v844_v55 = vmul.f32 %v823_v24, %v772_v53 }
 0x1e5   : > { %v894_v50 = vpop.permute.xlu0 %893 }
 0x1e6   : > { %v913_v52 = vadd.f32 %v894_v50, %v845_v49  ;;  %v912_v56 = vadd.f32 %v891_v32, %v844_v55 }
 0x1e7   : > { %v898_v57 = vpop.permute.xlu1 %897 }
 0x1e8   : > { %950 = vperm.xlu1 %1437, %v913_v52   ;;  %v914_v59 = vadd.f32 %v898_v57, %v846_v58 }
 0x1ec   : > { %944 = vperm.xlu1 %1437, %v911_v54  }
 0x1f0   : > { %947 = vperm.xlu1 %1437, %v912_v56  }
 0x1f4   : > { %953 = vperm.xlu1 %1437, %v914_v59  }
 0x216   : > { %v737_v60 = vpop.xlane.xlu0 %736 }
 0x217   : > { %v919_v22 = vmul.f32 %v1970_v7, %v737_v60 }
 0x218   : > { %v740_v0 = vpop.xlane.xlu1 %739 }
 0x219   : > { %v920_v14 = vmul.f32 %v1975_v9, %v740_v0 }
 0x21a   : > { %v743_v63 = vpop.xlane.xlu0 %742 }
 0x21b   : > { %v921_v30 = vmul.f32 %v1979_v10, %v743_v63 }
 0x21e   : > { %v746_v6 = vpop.xlane.xlu0 %745 }
 0x21f   : > { %v922_v35 = vmul.f32 %v1985_v11, %v746_v6 }
 0x253   : > { %v939_v3 = vpop.permute.xlu1 %938 }
 0x254   : > { %v971_v12 = vrot.slane %v939_v3, %v959_v4 }
 0x255   : > { %v933_v16 = vpop.permute.xlu0 %932 }
 0x256   : > { %v960_v20 = vrot.slane %v933_v16, %v959_v4 }
 0x257   : > { %v942_v8 = vpop.permute.xlu1 %941 }
 0x258   : > { %v975_v13 = vrot.slane %v942_v8, %v964_v5 }
 0x25a   : > { %v976_v17 = vsel %vm966_vm2, %v975_v13, %v971_v12 }
 0x25b   : > { %v936_v18 = vpop.permute.xlu1 %935  ;;  %v1030_v15 = vadd.f32 %v976_v17, %v920_v14 }
 0x25c   : > { %v965_v21 = vrot.slane %v936_v18, %v964_v5 }
 0x25d   : > { %v1036_v19 = vsel %vm543_vm0, %v1030_v15, -inf }
 0x25e   : > { %1037 = vmax.xlane.f32.xlu0 %v1036_v19  ;;  %v967_v23 = vsel %vm966_vm2, %v965_v21, %v960_v20 }
 0x25f   : > { %v1029_v24 = vadd.f32 %v967_v23, %v919_v22 }
 0x261   : > { %v1033_v25 = vsel %vm543_vm0, %v1029_v24, -inf }
 0x262   : > { %1034 = vmax.xlane.f32.xlu1 %v1033_v25 }
 0x263   : > { %v951_v26 = vpop.permute.xlu1 %950 }
 0x264   : > { %v989_v33 = vrot.slane %v951_v26, %v959_v4 }
 0x267   : > { %v945_v9 = vpop.permute.xlu1 %944 }
 0x268   : > { %v980_v28 = vrot.slane %v945_v9, %v959_v4 }
 0x26b   : > { %v948_v27 = vpop.permute.xlu1 %947 }
 0x26c   : > { %v984_v29 = vrot.slane %v948_v27, %v964_v5 }
 0x26e   : > { %v985_v31 = vsel %vm966_vm2, %v984_v29, %v980_v28 }
 0x26f   : > { %v954_v32 = vpop.permute.xlu1 %953  ;;  %v1031_v7 = vadd.f32 %v985_v31, %v921_v30 }
 0x270   : > { %v993_v34 = vrot.slane %v954_v32, %v964_v5 }
 0x271   : > { %v1039_v36 = vsel %vm543_vm0, %v1031_v7, -inf }
 0x272   : > { %1040 = vmax.xlane.f32.xlu0 %v1039_v36  ;;  %v994_v37 = vsel %vm966_vm2, %v993_v34, %v989_v33 }
 0x273   : > { %v1032_v38 = vadd.f32 %v994_v37, %v922_v35 }
 0x275   : > { %v1042_v39 = vsel %vm543_vm0, %v1032_v38, -inf }
 0x276   : > { %1043 = vmax.xlane.f32.xlu1 %v1042_v39 }
 0x2e7   : > { %v1038_v40 = vpop.xlane.xlu0 %1037 }
 0x2e8   : > { %v1046_v41 = vsub.f32 %v1030_v15, %v1038_v40 }
 0x2ea   : > { %v1051_v10 = vmul.f32 1.442695, %v1046_v41 }
 0x2eb   : > { %v1035_v42 = vpop.xlane.xlu1 %1034 }
 0x2ec   : > { %1446 = vpow2.f32 %v1051_v10  ;;  %v1045_v43 = vsub.f32 %v1029_v24, %v1035_v42 }
 0x2ee   : > { %v1049_v44 = vmul.f32 1.442695, %v1045_v43 }
 0x2f0   : > { %1448 = vpow2.f32 %v1049_v44 }
 0x2f9   : > { %v1447_v45 = vpop.eup %1446 }
 0x2fa   : > { %v1060_v11 = vsel %vm543_vm0, %v1447_v45, 0.0 }
 0x2fb   : > { %1061 = vadd.xlane.f32.xlu1 %v1060_v11  ;;  %v1041_v46 = vpop.xlane.xlu0 %1040 }
 0x2fc   : > { %v1047_v47 = vsub.f32 %v1031_v7, %v1041_v46 }
 0x2fd   : > { %v1449_v48 = vpop.eup %1448 }
 0x2fe   : > { %v1053_v49 = vmul.f32 1.442695, %v1047_v47  ;;  %v1057_v50 = vsel %vm543_vm0, %v1449_v48, 0.0 }
 0x2ff   : > { %1058 = vadd.xlane.f32.xlu0 %v1057_v50  ;;  %v1044_v51 = vpop.xlane.xlu1 %1043 }
 0x300   : > { %1450 = vpow2.f32 %v1053_v49  ;;  %v1048_v52 = vsub.f32 %v1032_v38, %v1044_v51 }
 0x302   : > { %v1055_v53 = vmul.f32 1.442695, %v1048_v52 }
 0x304   : > { %1452 = vpow2.f32 %v1055_v53 }
 0x30d   : > { %v1451_v54 = vpop.eup %1450 }
 0x30e   : > { %v1063_v55 = vsel %vm543_vm0, %v1451_v54, 0.0 }
 0x30f   : > { %1064 = vadd.xlane.f32.xlu0 %v1063_v55 }
 0x311   : > { %v1453_v56 = vpop.eup %1452 }
 0x312   : > { %v1066_v57 = vsel %vm543_vm0, %v1453_v56, 0.0 }
 0x313   : > { %1067 = vadd.xlane.f32.xlu1 %v1066_v57 }
 0x384   : > { %v1062_v58 = vpop.xlane.xlu1 %1061 }
 0x385   : > { %1454 = vrcp.f32 %v1062_v58 }
 0x388   : > { %v1059_v59 = vpop.xlane.xlu0 %1058 }
 0x389   : > { %1456 = vrcp.f32 %v1059_v59 }
 0x392   : > { %v1455_v60 = vpop.eup %1454 }
 0x393   : > { %v1074_v61 = vmul.f32 %v1455_v60, %v1447_v45 }
 0x395   : > { %1078 = vst.msk [vmem:[%s499_s25 + $0x8] sm:$0xff] %vm543_vm0, %v1074_v61 }
 0x396   : > { %v1457_v62 = vpop.eup %1456 }
 0x397   : > { %v1073_v63 = vmul.f32 %v1457_v62, %v1449_v48 }
 0x398   : > { %v1065_v0 = vpop.xlane.xlu0 %1064 }
 0x399   : > { %1077 = vst.msk [vmem:[%s499_s25] sm:$0xff] %vm543_vm0, %v1073_v63  ;;  %1458 = vrcp.f32 %v1065_v0 }
 0x39c   : > { %v1068_v1 = vpop.xlane.xlu1 %1067 }
 0x39d   : > { %1460 = vrcp.f32 %v1068_v1 }
 0x3a6   : > { %v1459_v2 = vpop.eup %1458 }
 0x3a7   : > { %v1075_v3 = vmul.f32 %v1459_v2, %v1451_v54 }
 0x3a9   : > { %1079 = vst.msk [vmem:[%s499_s25 + $0x10] sm:$0xff] %vm543_vm0, %v1075_v3 }
 0x3aa   : > { %v1461_v4 = vpop.eup %1460 }
 0x3ab   : > { %v1076_v5 = vmul.f32 %v1461_v4, %v1453_v56 }
 0x3ad   : > { %1080 = vst.msk [vmem:[%s499_s25 + $0x18] sm:$0xff] %vm543_vm0, %v1076_v5 }
 0x3ae   : > { %1613 = shalt.err (!%p1610_p11)
}
 0x3af   : > { %s1614_s15 = scalar_lea.hbm %s2041_s9, 512  ;;  %s1618_s17 = scalar_lea.hbm %s2146_s1, 1024 }
 0x3b0   : > { %p1615_p13 = scmp.ne.s32.totalorder %s2041_s9, %s1614_s15  ;;  %p1619_p1 = scmp.lt.s32.totalorder %s2041_s9, %s2146_s1 }
 0x3b1   : > { %p1620_p12 = scmp.lt.s32.totalorder %s1618_s17, %s1614_s15 }
 0x3b2   : > { %p1616_p3 = pnand %p1615_p13, %p1809_p8 }
 0x3b3   : > { %p1621_p9 = por %p1620_p12, %p1619_p1 }
 0x3b4   : > { %p1617_p0 = pneg %p1616_p3 }
 0x3b6   : > { %p1622_p7 = pnand %p1621_p9, %p1617_p0 }
 0x3b8   : > { %1625 = shalt.err (!%p1622_p7)
}
 0x3b9   : > { %s1705_s16 = smov 128   ;;  %s1706_s23 = smov 8  }
 0x3ba   : > { %1353 = dma.vmem_to_hbm [thread:$0]  (%p1809_p8), %s2043_s21, 512, %s2041_s9, %s1082_s20, %s1705_s16, %s1705_s16, %s1706_s23  }
 0x3bb PF: > { %s2147_s25 = sld [smem:[#allocation17_spill]]  ;;  %p2150_p4 = scmp.ge.s32.totalorder %s1692_s14, 2 }
 0x3bc   : > { %s2148_s11 = sld [smem:[#allocation21_spill]] }
 0x3c1   : > { %s1111_s22 = sand.u32 1, %s2147_s25  }
 0x3c2   : > { %p2149_p5 = scmp.ne.s32.totalorder %s2148_s11, 0  ;;  %s1112_s5 = scalar_lea.sflag [#allocation4], %s1111_s22 }
 0x3c4   : > { %p1373_p2 = pnand %p2150_p4, %p2149_p5 }
 0x3c6   : > { %p1374_p6 = pneg %p1373_p2 }
 0x3c8   : > { %1667 = dma.done.wait (%p1374_p6), %s1112_s5, 512  }
 0x3c9   : > { %1669 = vsyncadd (%p1374_p6), %s1112_s5, 4294966784  ;;  %s31_s14 = sadd.s32 1, %s1692_s14   ;;  %s2151_s4 = sld [smem:[#allocation18_spill]] }
 0x3ca   : > { %p28_p10 = scmp.ge.s32.totalorder %s31_s14, 4   ;;  %s2152_s11 = sld [smem:[#allocation23_spill]] }
 0x3cb   : > { %s2153_s27 = sld [smem:[#allocation22_spill]]  ;;  %s2154_s30 = smov %s1676_s10 }
 0x3cc   : > { %s2156_s12 = smov %s1688_s13 }
 0x3cd   :  { %30 = sbr.rel (!%p28_p10) target bundleno = 15 (0xf), region = 142 }
 0x3cf   : > { %s2155_s10 = smov %s2151_s4 }
 0x3d1   : > { %s2157_s13 = smov %s2153_s27 }
 0x3d2   :  { %1117 = vsyncpa [#allocation3], 1 }
 0x3d3   :  { %1119 = vsyncpa [#allocation3 + $0x1], 1 }
 0x3d4   :  { %1120 = vsyncpa [#allocation6], 1 }
 0x3d5   :  { %1122 = vsyncpa [#allocation6 + $0x1], 1 }
 0x3d6   :  { %1123 = vsyncpa [#allocation9], 1 }
 0x3d7   :  { %1125 = vsyncpa [#allocation9 + $0x1], 1 }
 0x3d8   :  { %1126 = vsyncpa [#allocation4], 1 }
 0x3d9   :  { %1128 = vsyncpa [#allocation4 + $0x1], 1 }

</bundles_post_ra>
